<compile_context>
chip_gen: v6e
topology: v6e:2x2x1
jax: 0.10.0
libtpu: 0.0.40
codegen_flags: <defaults>
</compile_context>

<pallas_src>
import functools

import jax
import jax.numpy as jnp
from jax.experimental import pallas as pl
from jax.experimental.pallas import tpu as pltpu

BF16_SUBLANE = 16  # bf16 packs 16 rows per sublane tile


def _round_up(x, m):
    return (x + m - 1) // m * m


def _choose_batch_tile(batch, block_batch=512):
    """Pick the batch tile size (multiple of 16 for the bf16 x operand).

    Minimizes batch-padding waste, prefers large tiles (amortize ~0.35us/step
    grid overhead), and keeps >=2 grid steps when batch > 16 so the "parallel"
    batch axis can shard across the two v7x TensorCores (free on v5e/v6e).
    """
    if batch <= BF16_SUBLANE:
        return BF16_SUBLANE
    block_batch = max(BF16_SUBLANE, (block_batch // BF16_SUBLANE) * BF16_SUBLANE)
    half = _round_up(-(-batch // 2), BF16_SUBLANE)   # ceil(batch/2), 16-aligned
    cands = {c for c in (128, 256, 512, 1024) if c <= block_batch}
    cands.add(min(half, block_batch))                # fine-grained small-batch option
    cands = {c for c in cands if c <= half} or {BF16_SUBLANE}
    # Minimize padding waste; prefer the larger tile on ties (fewer grid steps).
    return min(cands, key=lambda c: (_round_up(batch, c) - batch, -c))


def _decoder_mlp_kernel(n_hidden, *refs):
    """refs = (x_ref, w0, b0, w1, b1, ..., w_last, b_last, out_ref).

    n_hidden hidden layers use Linear + ReLU; the final Linear has no ReLU.
    x and weights are bf16 MXU operands; accumulation / bias / ReLU are f32.
    """
    x_ref, out_ref = refs[0], refs[-1]
    param_refs = refs[1:-1]                     # alternating (w_bf16, b_f32)
    n_layers = len(param_refs) // 2

    h = x_ref[...]                              # bf16 (tm, in_dim)
    for layer in range(n_layers):
        w = param_refs[2 * layer][...]          # bf16 (in, out)
        b = param_refs[2 * layer + 1][...]      # f32  (1, out)
        h = jnp.dot(h.astype(jnp.bfloat16), w,
                    preferred_element_type=jnp.float32) + b
        if layer < n_hidden:                    # ReLU except on final projection
            h = jnp.maximum(h, 0.0)
    out_ref[...] = h.astype(out_ref.dtype)


def prepare_decoder_params(weights, biases):
    """One-time parameter preparation, hoisted out of the forward path.

    weights: list of (in, out) arrays (already transposed vs. torch Linear)
    biases:  list of (out,) or (1, out) arrays
    Returns a flat tuple (w0_bf16, b0_f32, w1_bf16, b1_f32, ...).
    """
    assert len(weights) == len(biases)
    params = []
    for w, b in zip(weights, biases):
        params.append(jnp.asarray(w, jnp.bfloat16))
        params.append(jnp.asarray(b, jnp.float32).reshape(1, -1))
    return tuple(params)


def decoder_forward(x, params, sigma, *, block_batch=512):
    """Pallas-backed forward pass.

    x:      (B, embedding_dim) float32 (or bf16)
    params: output of prepare_decoder_params
    sigma:  (data_dim,) float32 -- returned as-is (module semantics)
    """
    n_layers = len(params) // 2
    assert n_layers >= 1 and len(params) == 2 * n_layers
    n_hidden = n_layers - 1

    batch, in_dim = x.shape
    assert params[0].shape[0] == in_dim, "x feature dim must match first weight"
    data_dim = params[-2].shape[1]
    dims = [in_dim] + [params[2 * i].shape[1] for i in range(n_layers)]

    # ---- batch tiling (only the batch dim is ever padded) ----
    tm = _choose_batch_tile(batch, block_batch)
    pbatch = _round_up(batch, tm)
    grid = (pbatch // tm,)

    xb = x.astype(jnp.bfloat16)                          # fused cast + pad
    xp = xb if pbatch == batch else jnp.pad(xb, ((0, pbatch - batch), (0, 0)))

    # ---- cost / VMEM bookkeeping ----
    param_bytes = sum(int(p.size) * p.dtype.itemsize for p in params)
    flops = 2.0 * pbatch * sum(dims[i] * dims[i + 1] for i in range(n_layers))
    bytes_accessed = int(xp.size) * 2 + pbatch * data_dim * 4 + param_bytes
    vmem_limit = int(min(
        64 * 2 ** 20,
        max(32 * 2 ** 20,                                 # v5e default is only 16 MiB
            2 * param_bytes                               # weights (+ headroom)
            + 4 * tm * (in_dim * 2 + data_dim * 4)        # double-buffered x / out tiles
            + 8 * tm * max(dims) * 4)))                   # intermediate slack

    kernel = functools.partial(_decoder_mlp_kernel, n_hidden)
    out_spec = pl.BlockSpec((tm, data_dim), lambda i: (i, 0))

    def _in_specs(single_buffer_params):
        # x tiled over the batch grid; weights/biases use a constant index_map
        # (same block every step) so they stay VMEM-resident across all tiles.
        specs = [pl.BlockSpec((tm, in_dim), lambda i: (i, 0))]
        for p in params:
            if single_buffer_params:
                specs.append(pl.BlockSpec(p.shape, lambda i: (0, 0),
                                          pipeline_mode=pl.Buffered(1)))
            else:
                specs.append(pl.BlockSpec(p.shape, lambda i: (0, 0)))
        return specs

    def _run(single_buffer_params):
        return pl.pallas_call(
            kernel,
            out_shape=jax.ShapeDtypeStruct((pbatch, data_dim), jnp.float32),
            grid=grid,
            in_specs=_in_specs(single_buffer_params),
            out_specs=out_spec,
            compiler_params=pltpu.CompilerParams(
                dimension_semantics=("parallel",),        # shard batch tiles across TCs
                vmem_limit_bytes=vmem_limit,
            ),
            cost_estimate=pl.CostEstimate(
                flops=int(flops), transcendentals=0,
                bytes_accessed=int(bytes_accessed)),
        )(xp, *params)

    try:
        # Constant-index weight blocks single-buffered: halves resident-weight VMEM.
        out_padded = _run(True)
    except Exception:
        # TODO(synk): pipeline_mode=pl.Buffered(1) unsupported on this jax build;
        # fall back to default double-buffered weight blocks (harmless for small params).
        out_padded = _run(False)

    # Strip batch padding only (no feature padding was introduced); sigma untouched.
    out = out_padded if pbatch == batch else out_padded[:batch]
    return out, sigma


def init_decoder_params(key, embedding_dim, decompress_dims, data_dim):
    """Deterministic synthetic parameter init matching the torch module's shapes."""
    dims = [embedding_dim] + list(decompress_dims) + [data_dim]
    weights, biases = [], []
    for i in range(len(dims) - 1):
        key, wk, bk = jax.random.split(key, 3)
        fan_in, fan_out = dims[i], dims[i + 1]
        scale = 1.0 / jnp.sqrt(jnp.float32(fan_in))
        # Stored as (in, out): equivalent to torch weight (out, in) transposed.
        w = jax.random.uniform(wk, (fan_in, fan_out), jnp.float32, -scale, scale)
        b = jax.random.uniform(bk, (1, fan_out), jnp.float32, -scale, scale)
        weights.append(w)
        biases.append(b)
    sigma = jnp.ones((data_dim,), jnp.float32) * 0.1
    return weights, biases, sigma


def reference_forward_bf16(x, weights, biases, sigma):
    """Pure-JAX reference matching the kernel's numerics (bf16 operands, f32 accum)."""
    h = x.astype(jnp.float32)
    for i, (w, b) in enumerate(zip(weights, biases)):
        h = jnp.dot(h.astype(jnp.bfloat16), w.astype(jnp.bfloat16),
                    preferred_element_type=jnp.float32) + b
        if i < len(weights) - 1:
            h = jnp.maximum(h, 0.0)
    return h, sigma


def reference_forward_f32(x, weights, biases, sigma):
    """Pure f32 reference (original module semantics) for a relaxed sanity check."""
    h = x
    for i, (w, b) in enumerate(zip(weights, biases)):
        h = h @ w + b
        if i < len(weights) - 1:
            h = jnp.maximum(h, 0.0)
    return h, sigma


if __name__ == "__main__":
    # Small shapes consistent with the module's forward:
    #   batch=8, embedding_dim=32, decompress_dims=(64, 64), data_dim=16
    embedding_dim = 32
    decompress_dims = (64, 64)
    data_dim = 16
    batch = 8

    key = jax.random.PRNGKey(0)
    key, xk, pk = jax.random.split(key, 3)

    x = jax.random.normal(xk, (batch, embedding_dim), jnp.float32)
    weights, biases, sigma = init_decoder_params(
        pk, embedding_dim, decompress_dims, data_dim
    )

    # One-time parameter preparation (hoisted out of the forward path).
    params = prepare_decoder_params(weights, biases)

    out, sig = decoder_forward(x, params, sigma)
    out = jax.block_until_ready(out)
    sig = jax.block_until_ready(sig)

    ref_out, ref_sig = reference_forward_bf16(x, weights, biases, sigma)
    f32_out, _ = reference_forward_f32(x, weights, biases, sigma)

    assert out.shape == (batch, data_dim)
    assert sig.shape == (data_dim,)
    # Tight check vs. a reference using the same bf16-operand / f32-accumulate math.
    assert jnp.allclose(out, ref_out, atol=1e-4, rtol=1e-4)
    # Relaxed check vs. the pure-f32 module semantics (bf16 mantissa error only).
    assert jnp.allclose(out, f32_out, atol=5e-2, rtol=5e-2)
    assert jnp.allclose(sig, ref_sig)

    print("KERNEL_OK")
</pallas_src>

<mosaic_0001>
module attributes {stable_mosaic.version = 11 : i64} {
  func.func @_decoder_mlp_kernel(%arg0: i32, %arg1: memref<16x32xbf16, #tpu.memory_space<vmem>>, %arg2: memref<32x64xbf16, #tpu.memory_space<vmem>>, %arg3: memref<1x64xf32, #tpu.memory_space<vmem>>, %arg4: memref<64x64xbf16, #tpu.memory_space<vmem>>, %arg5: memref<1x64xf32, #tpu.memory_space<vmem>>, %arg6: memref<64x16xbf16, #tpu.memory_space<vmem>>, %arg7: memref<1x16xf32, #tpu.memory_space<vmem>>, %arg8: memref<16x16xf32, #tpu.memory_space<vmem>>) attributes {dimension_semantics = [#tpu.dimension_semantics<parallel>], iteration_bounds = array<i64: 1>, scalar_prefetch = 0 : i64, scratch_operands = 0 : i64, tpu.core_type = #tpu.core_type<tc>, window_params = [{transform_indices = @transform_0, window_bounds = array<i64: 16, 32>}, {pipeline_mode = #tpu.pipeline_mode<synchronous>, transform_indices = @transform_1, window_bounds = array<i64: 32, 64>}, {pipeline_mode = #tpu.pipeline_mode<synchronous>, transform_indices = @transform_2, window_bounds = array<i64: 1, 64>}, {pipeline_mode = #tpu.pipeline_mode<synchronous>, transform_indices = @transform_3, window_bounds = array<i64: 64, 64>}, {pipeline_mode = #tpu.pipeline_mode<synchronous>, transform_indices = @transform_4, window_bounds = array<i64: 1, 64>}, {pipeline_mode = #tpu.pipeline_mode<synchronous>, transform_indices = @transform_5, window_bounds = array<i64: 64, 16>}, {pipeline_mode = #tpu.pipeline_mode<synchronous>, transform_indices = @transform_6, window_bounds = array<i64: 1, 16>}, {transform_indices = @transform_7, window_bounds = array<i64: 16, 16>}]} {
    %c0 = arith.constant 0 : index
    %c0_0 = arith.constant 0 : index
    %0 = vector.load %arg1[%c0, %c0_0] : memref<16x32xbf16, #tpu.memory_space<vmem>>, vector<16x32xbf16>
    %c0_1 = arith.constant 0 : index
    %c0_2 = arith.constant 0 : index
    %1 = vector.load %arg2[%c0_1, %c0_2] : memref<32x64xbf16, #tpu.memory_space<vmem>>, vector<32x64xbf16>
    %c0_3 = arith.constant 0 : index
    %c0_4 = arith.constant 0 : index
    %2 = vector.load %arg3[%c0_3, %c0_4] : memref<1x64xf32, #tpu.memory_space<vmem>>, vector<1x64xf32>
    %cst = arith.constant dense<0.000000e+00> : vector<16x64xf32>
    %3 = tpu.matmul %0, %1, %cst {dimension_numbers = #tpu.dot_dimension_numbers<[1], [0], [0], [1], [0, 0, 1, 1], [], []>} : vector<16x32xbf16>, vector<32x64xbf16>, vector<16x64xf32> -> vector<16x64xf32>
    %4 = vector.broadcast %2 : vector<1x64xf32> to vector<16x64xf32>
    %5 = arith.addf %3, %4 : vector<16x64xf32>
    %cst_5 = arith.constant 0.000000e+00 : f32
    %6 = vector.broadcast %cst_5 : f32 to vector<16x64xf32>
    %7 = arith.maximumf %5, %6 : vector<16x64xf32>
    %c0_6 = arith.constant 0 : index
    %c0_7 = arith.constant 0 : index
    %8 = vector.load %arg4[%c0_6, %c0_7] : memref<64x64xbf16, #tpu.memory_space<vmem>>, vector<64x64xbf16>
    %c0_8 = arith.constant 0 : index
    %c0_9 = arith.constant 0 : index
    %9 = vector.load %arg5[%c0_8, %c0_9] : memref<1x64xf32, #tpu.memory_space<vmem>>, vector<1x64xf32>
    %10 = arith.truncf %7 : vector<16x64xf32> to vector<16x64xbf16>
    %cst_10 = arith.constant dense<0.000000e+00> : vector<16x64xf32>
    %11 = tpu.matmul %10, %8, %cst_10 {dimension_numbers = #tpu.dot_dimension_numbers<[1], [0], [0], [1], [0, 0, 1, 1], [], []>} : vector<16x64xbf16>, vector<64x64xbf16>, vector<16x64xf32> -> vector<16x64xf32>
    %12 = vector.broadcast %9 : vector<1x64xf32> to vector<16x64xf32>
    %13 = arith.addf %11, %12 : vector<16x64xf32>
    %cst_11 = arith.constant 0.000000e+00 : f32
    %14 = vector.broadcast %cst_11 : f32 to vector<16x64xf32>
    %15 = arith.maximumf %13, %14 : vector<16x64xf32>
    %c0_12 = arith.constant 0 : index
    %c0_13 = arith.constant 0 : index
    %16 = vector.load %arg6[%c0_12, %c0_13] : memref<64x16xbf16, #tpu.memory_space<vmem>>, vector<64x16xbf16>
    %c0_14 = arith.constant 0 : index
    %c0_15 = arith.constant 0 : index
    %17 = vector.load %arg7[%c0_14, %c0_15] : memref<1x16xf32, #tpu.memory_space<vmem>>, vector<1x16xf32>
    %18 = arith.truncf %15 : vector<16x64xf32> to vector<16x64xbf16>
    %cst_16 = arith.constant dense<0.000000e+00> : vector<16x16xf32>
    %19 = tpu.matmul %18, %16, %cst_16 {dimension_numbers = #tpu.dot_dimension_numbers<[1], [0], [0], [1], [0, 0, 1, 1], [], []>} : vector<16x64xbf16>, vector<64x16xbf16>, vector<16x16xf32> -> vector<16x16xf32>
    %20 = vector.broadcast %17 : vector<1x16xf32> to vector<16x16xf32>
    %21 = arith.addf %19, %20 : vector<16x16xf32>
    %c0_17 = arith.constant 0 : index
    %c0_18 = arith.constant 0 : index
    %22 = vector.load %arg8[%c0_17, %c0_18] : memref<16x16xf32, #tpu.memory_space<vmem>>, vector<16x16xf32>
    tpu.vector_store %arg8[%c0_17, %c0_18], %21 {strides = array<i32>} : memref<16x16xf32, #tpu.memory_space<vmem>>, vector<16x16xf32>,
    return
  }
  func.func @transform_0(%arg0: i32) -> (i32, i32) {
    %c0_i32 = arith.constant 0 : i32
    %c0_i32_0 = arith.constant 0 : i32
    return %arg0, %c0_i32 : i32, i32
  }
  func.func @transform_1(%arg0: i32) -> (i32, i32) {
    %c0_i32 = arith.constant 0 : i32
    %c0_i32_0 = arith.constant 0 : i32
    %c0_i32_1 = arith.constant 0 : i32
    return %c0_i32, %c0_i32_0 : i32, i32
  }
  func.func @transform_2(%arg0: i32) -> (i32, i32) {
    %c0_i32 = arith.constant 0 : i32
    %c0_i32_0 = arith.constant 0 : i32
    %c0_i32_1 = arith.constant 0 : i32
    return %c0_i32, %c0_i32_0 : i32, i32
  }
  func.func @transform_3(%arg0: i32) -> (i32, i32) {
    %c0_i32 = arith.constant 0 : i32
    %c0_i32_0 = arith.constant 0 : i32
    %c0_i32_1 = arith.constant 0 : i32
    return %c0_i32, %c0_i32_0 : i32, i32
  }
  func.func @transform_4(%arg0: i32) -> (i32, i32) {
    %c0_i32 = arith.constant 0 : i32
    %c0_i32_0 = arith.constant 0 : i32
    %c0_i32_1 = arith.constant 0 : i32
    return %c0_i32, %c0_i32_0 : i32, i32
  }
  func.func @transform_5(%arg0: i32) -> (i32, i32) {
    %c0_i32 = arith.constant 0 : i32
    %c0_i32_0 = arith.constant 0 : i32
    %c0_i32_1 = arith.constant 0 : i32
    return %c0_i32, %c0_i32_0 : i32, i32
  }
  func.func @transform_6(%arg0: i32) -> (i32, i32) {
    %c0_i32 = arith.constant 0 : i32
    %c0_i32_0 = arith.constant 0 : i32
    %c0_i32_1 = arith.constant 0 : i32
    return %c0_i32, %c0_i32_0 : i32, i32
  }
  func.func @transform_7(%arg0: i32) -> (i32, i32) {
    %c0_i32 = arith.constant 0 : i32
    %c0_i32_0 = arith.constant 0 : i32
    return %arg0, %c0_i32 : i32, i32
  }
}

module attributes {stable_mosaic.version = 11 : i64} {
  func.func @_decoder_mlp_kernel(%arg0: i32, %arg1: memref<16x32xbf16, #tpu.memory_space<vmem>>, %arg2: memref<32x64xbf16, #tpu.memory_space<vmem>>, %arg3: memref<1x64xf32, #tpu.memory_space<vmem>>, %arg4: memref<64x64xbf16, #tpu.memory_space<vmem>>, %arg5: memref<1x64xf32, #tpu.memory_space<vmem>>, %arg6: memref<64x16xbf16, #tpu.memory_space<vmem>>, %arg7: memref<1x16xf32, #tpu.memory_space<vmem>>, %arg8: memref<16x16xf32, #tpu.memory_space<vmem>>) attributes {dimension_semantics = [#tpu.dimension_semantics<parallel>], iteration_bounds = array<i64: 1>, scalar_prefetch = 0 : i64, scratch_operands = 0 : i64, tpu.core_type = #tpu.core_type<tc>, window_params = [{transform_indices = @transform_0, window_bounds = array<i64: 16, 32>}, {pipeline_mode = #tpu.pipeline_mode<synchronous>, transform_indices = @transform_1, window_bounds = array<i64: 32, 64>}, {pipeline_mode = #tpu.pipeline_mode<synchronous>, transform_indices = @transform_2, window_bounds = array<i64: 1, 64>}, {pipeline_mode = #tpu.pipeline_mode<synchronous>, transform_indices = @transform_3, window_bounds = array<i64: 64, 64>}, {pipeline_mode = #tpu.pipeline_mode<synchronous>, transform_indices = @transform_4, window_bounds = array<i64: 1, 64>}, {pipeline_mode = #tpu.pipeline_mode<synchronous>, transform_indices = @transform_5, window_bounds = array<i64: 64, 16>}, {pipeline_mode = #tpu.pipeline_mode<synchronous>, transform_indices = @transform_6, window_bounds = array<i64: 1, 16>}, {transform_indices = @transform_7, window_bounds = array<i64: 16, 16>}]} {
    %c0 = arith.constant 0 : index
    %c0_0 = arith.constant 0 : index
    %0 = vector.load %arg1[%c0, %c0_0] : memref<16x32xbf16, #tpu.memory_space<vmem>>, vector<16x32xbf16>
    %c0_1 = arith.constant 0 : index
    %c0_2 = arith.constant 0 : index
    %1 = vector.load %arg2[%c0_1, %c0_2] : memref<32x64xbf16, #tpu.memory_space<vmem>>, vector<32x64xbf16>
    %c0_3 = arith.constant 0 : index
    %c0_4 = arith.constant 0 : index
    %2 = vector.load %arg3[%c0_3, %c0_4] : memref<1x64xf32, #tpu.memory_space<vmem>>, vector<1x64xf32>
    %cst = arith.constant dense<0.000000e+00> : vector<16x64xf32>
    %3 = tpu.matmul %0, %1, %cst {dimension_numbers = #tpu.dot_dimension_numbers<[1], [0], [0], [1], [0, 0, 1, 1], [], []>} : vector<16x32xbf16>, vector<32x64xbf16>, vector<16x64xf32> -> vector<16x64xf32>
    %4 = vector.broadcast %2 : vector<1x64xf32> to vector<16x64xf32>
    %5 = arith.addf %3, %4 : vector<16x64xf32>
    %cst_5 = arith.constant 0.000000e+00 : f32
    %6 = vector.broadcast %cst_5 : f32 to vector<16x64xf32>
    %7 = arith.maximumf %5, %6 : vector<16x64xf32>
    %c0_6 = arith.constant 0 : index
    %c0_7 = arith.constant 0 : index
    %8 = vector.load %arg4[%c0_6, %c0_7] : memref<64x64xbf16, #tpu.memory_space<vmem>>, vector<64x64xbf16>
    %c0_8 = arith.constant 0 : index
    %c0_9 = arith.constant 0 : index
    %9 = vector.load %arg5[%c0_8, %c0_9] : memref<1x64xf32, #tpu.memory_space<vmem>>, vector<1x64xf32>
    %10 = arith.truncf %7 : vector<16x64xf32> to vector<16x64xbf16>
    %cst_10 = arith.constant dense<0.000000e+00> : vector<16x64xf32>
    %11 = tpu.matmul %10, %8, %cst_10 {dimension_numbers = #tpu.dot_dimension_numbers<[1], [0], [0], [1], [0, 0, 1, 1], [], []>} : vector<16x64xbf16>, vector<64x64xbf16>, vector<16x64xf32> -> vector<16x64xf32>
    %12 = vector.broadcast %9 : vector<1x64xf32> to vector<16x64xf32>
    %13 = arith.addf %11, %12 : vector<16x64xf32>
    %cst_11 = arith.constant 0.000000e+00 : f32
    %14 = vector.broadcast %cst_11 : f32 to vector<16x64xf32>
    %15 = arith.maximumf %13, %14 : vector<16x64xf32>
    %c0_12 = arith.constant 0 : index
    %c0_13 = arith.constant 0 : index
    %16 = vector.load %arg6[%c0_12, %c0_13] : memref<64x16xbf16, #tpu.memory_space<vmem>>, vector<64x16xbf16>
    %c0_14 = arith.constant 0 : index
    %c0_15 = arith.constant 0 : index
    %17 = vector.load %arg7[%c0_14, %c0_15] : memref<1x16xf32, #tpu.memory_space<vmem>>, vector<1x16xf32>
    %18 = arith.truncf %15 : vector<16x64xf32> to vector<16x64xbf16>
    %cst_16 = arith.constant dense<0.000000e+00> : vector<16x16xf32>
    %19 = tpu.matmul %18, %16, %cst_16 {dimension_numbers = #tpu.dot_dimension_numbers<[1], [0], [0], [1], [0, 0, 1, 1], [], []>} : vector<16x64xbf16>, vector<64x16xbf16>, vector<16x16xf32> -> vector<16x16xf32>
    %20 = vector.broadcast %17 : vector<1x16xf32> to vector<16x16xf32>
    %21 = arith.addf %19, %20 : vector<16x16xf32>
    %c0_17 = arith.constant 0 : index
    %c0_18 = arith.constant 0 : index
    %22 = vector.load %arg8[%c0_17, %c0_18] : memref<16x16xf32, #tpu.memory_space<vmem>>, vector<16x16xf32>
    tpu.vector_store %arg8[%c0_17, %c0_18], %21 {strides = array<i32>} : memref<16x16xf32, #tpu.memory_space<vmem>>, vector<16x16xf32>,
    return
  }
  func.func @transform_0(%arg0: i32) -> (i32, i32) {
    %c0_i32 = arith.constant 0 : i32
    %c0_i32_0 = arith.constant 0 : i32
    return %arg0, %c0_i32 : i32, i32
  }
  func.func @transform_1(%arg0: i32) -> (i32, i32) {
    %c0_i32 = arith.constant 0 : i32
    %c0_i32_0 = arith.constant 0 : i32
    %c0_i32_1 = arith.constant 0 : i32
    return %c0_i32, %c0_i32_0 : i32, i32
  }
  func.func @transform_2(%arg0: i32) -> (i32, i32) {
    %c0_i32 = arith.constant 0 : i32
    %c0_i32_0 = arith.constant 0 : i32
    %c0_i32_1 = arith.constant 0 : i32
    return %c0_i32, %c0_i32_0 : i32, i32
  }
  func.func @transform_3(%arg0: i32) -> (i32, i32) {
    %c0_i32 = arith.constant 0 : i32
    %c0_i32_0 = arith.constant 0 : i32
    %c0_i32_1 = arith.constant 0 : i32
    return %c0_i32, %c0_i32_0 : i32, i32
  }
  func.func @transform_4(%arg0: i32) -> (i32, i32) {
    %c0_i32 = arith.constant 0 : i32
    %c0_i32_0 = arith.constant 0 : i32
    %c0_i32_1 = arith.constant 0 : i32
    return %c0_i32, %c0_i32_0 : i32, i32
  }
  func.func @transform_5(%arg0: i32) -> (i32, i32) {
    %c0_i32 = arith.constant 0 : i32
    %c0_i32_0 = arith.constant 0 : i32
    %c0_i32_1 = arith.constant 0 : i32
    return %c0_i32, %c0_i32_0 : i32, i32
  }
  func.func @transform_6(%arg0: i32) -> (i32, i32) {
    %c0_i32 = arith.constant 0 : i32
    %c0_i32_0 = arith.constant 0 : i32
    %c0_i32_1 = arith.constant 0 : i32
    return %c0_i32, %c0_i32_0 : i32, i32
  }
  func.func @transform_7(%arg0: i32) -> (i32, i32) {
    %c0_i32 = arith.constant 0 : i32
    %c0_i32_0 = arith.constant 0 : i32
    return %arg0, %c0_i32 : i32, i32
  }
}

</mosaic_0001>

<bundles_post_ra>
// kernel: tpu_custom_call.1
= control target key start
LH: loop header
LB: loop body
LE: loop exit
PB: predicated region body
PF: predicated region fallthrough
CT: control target
= control target key end

     0   :  { %12 = vsyncpa [#allocation3], 0  ;;  %s567_s0 = inlined_call_operand.vmem [shape: bf16[16,32], index: 0, kind: input, shape index: {}]   ;;  %s568_s1 = inlined_call_operand.hbm [shape: bf16[32,64], index: 1, kind: input, shape index: {}]   ;;  %s569_s2 = inlined_call_operand.vmem [shape: f32[1,64], index: 2, kind: input, shape index: {}]   ;;  %s570_s3 = inlined_call_operand.vmem [shape: bf16[64,64], index: 3, kind: input, shape index: {}]   ;;  %s571_s4 = inlined_call_operand.hbm [shape: f32[1,64], index: 4, kind: input, shape index: {}]   ;;  %s572_s5 = inlined_call_operand.vmem [shape: bf16[64,16], index: 5, kind: input, shape index: {}]   ;;  %s573_s6 = inlined_call_operand.vmem [shape: f32[1,16], index: 6, kind: input, shape index: {}]   ;;  %s574_s7 = inlined_call_operand.hbm [shape: f32[16,16], index: 7, kind: output, shape index: {}]  }
   0x1   :  { %13 = vsyncpa [#allocation6], 0 }
   0x2   :  { %14 = vsyncpa [#allocation4], 0  ;;  %s471_s24 = smov [#allocation2]  }
   0x3   :  { %s22_s25 = sshll.u32 %s471_s24, 4  ;;  %s23_s25 = int_to_ptr.vmem [resolvable:$true] %s22_s25 }
   0x4   :  { %s413_s26 = scalar_lea.vmem %s23_s25, 256  ;;  %p418_p1 = scmp.lt.s32.totalorder %s23_s25, %s23_s25 }
   0x5   :  { %p414_p0 = scmp.ne.s32.totalorder %s23_s25, %s413_s26  ;;  %p419_p2 = scmp.lt.s32.totalorder %s413_s26, %s413_s26 }
   0x7   :  { %p420_p3 = por %p419_p2, %p418_p1 }
   0x9   :  { %p421_p4 = pnand %p420_p3, %p414_p0 }
   0xb   :  { %424 = shalt.err (!%p421_p4)
}
   0xc   :  { %s472_s27 = smov 64   ;;  %s473_s28 = smov 4  }
   0xd   :  { %28 = dma.hbm_to_vmem [thread:$0]  %s568_s1, 256, %s23_s25, [#allocation3], %s472_s27, %s472_s27, %s473_s28  }
   0xe   :  { %s474_s8 = smov [#allocation5]  }
   0xf   :  { %s39_s9 = sshll.u32 %s474_s8, 4  ;;  %s40_s9 = int_to_ptr.vmem [resolvable:$true] %s39_s9 }
  0x10   :  { %s433_s10 = scalar_lea.vmem %s40_s9, 16  ;;  %s437_s11 = scalar_lea.vmem %s40_s9, 32 }
  0x11   :  { %p434_p5 = scmp.ne.s32.totalorder %s40_s9, %s433_s10  ;;  %p438_p6 = scmp.lt.s32.totalorder %s40_s9, %s40_s9 }
  0x12   :  { %p439_p7 = scmp.lt.s32.totalorder %s437_s11, %s433_s10 }
  0x14   :  { %p440_p8 = por %p439_p7, %p438_p6 }
  0x16   :  { %p441_p9 = pnand %p440_p8, %p434_p5 }
  0x18   :  { %444 = shalt.err (!%p441_p9)
}
  0x19   :  { %42 = dma.hbm_to_vmem [thread:$0]  %s571_s4, 16, %s40_s9, [#allocation6]  }
  0x1a   :  { %465 = dma.done.wait [#allocation3], 256  }
  0x1b   :  { %466 = vsyncadd [#allocation3], 4294967040 }
  0x1c   :  { %467 = dma.done.wait [#allocation6], 16  }
  0x1d   :  { %468 = vsyncadd [#allocation6], 4294967280  ;;  %v475_v0 = vmov 0.0   ;;  %vm476_vm0 = vmmov 0   ;;  %v394_v1 = vld [vmem:[#allocation2 + $0x8] sm:$0xff]   ;;  %v395_v2 = vld [vmem:[#allocation2] sm:$0xff]  }
  0x1e   :  { %353 = vmatprep.subr.bf16.mxu0 %v475_v0  ;;  %357 = vmatprep.mubr.msk.bf16.mxu0 %vm476_vm0, %v475_v0  ;;  %v397_v3 = vld [vmem:[%s570_s3 + $0x18] sm:$0xff]   ;;  %v396_v4 = vld [vmem:[%s567_s0] sm:$0xff]   ;;  %vm84_vm1 = vcmask 261120   ;;  %v398_v5 = vld [vmem:[%s570_s3 + $0x10] sm:$0xff]   ;;  %vm171_vm2 = vcmask 523264   ;;  %vm302_vm3 = vcmask 130048  }
  0x1f   :  { %361 = vmatprep.subr.bf16.mxu1 %v475_v0  ;;  %369 = vmatprep.mubr.msk.bf16.mxu1 %vm476_vm0, %v475_v0  ;;  %v399_v6 = vld [vmem:[%s570_s3 + $0x8] sm:$0xff]   ;;  %v400_v7 = vld [vmem:[%s570_s3] sm:$0xff]   ;;  %v401_v8 = vld [vmem:[%s572_s5 + $0x18] sm:$0xff]  }
  0x20   :  { %354 = vmatpush3.bf16.msra.mxu0 %v394_v1  ;;  %362 = vmatpush3.bf16.msra.mxu1 %v397_v3  ;;  %v323_v9 = vld [vmem:[%s569_s2] ss:$0 sm:$0xff]  ;;  %v402_v19 = vld [vmem:[%s572_s5 + $0x10] sm:$0xff]   ;;  %v403_v20 = vld [vmem:[%s572_s5 + $0x8] sm:$0xff]  }
  0x21   :  { %355 = vmatprep.subr.bf16.mxu0 %v475_v0  ;;  %363 = vmatprep.subr.bf16.mxu1 %v475_v0  ;;  %v404_v21 = vld [vmem:[%s572_s5] sm:$0xff]   ;;  %v328_v22 = vld [vmem:[#allocation5] ss:$0 sm:$0xff]  ;;  %s477_s5 = smov [#allocation7]  }
  0x22   :  { %v334_v32 = vld [vmem:[%s573_s6] ss:$0 sm:$0xff]  ;;  %s310_s8 = sshll.u32 %s477_s5, 4  ;;  %s311_s8 = int_to_ptr.vmem [resolvable:$true] %s310_s8 }
  0x23   :  { %s445_s9 = scalar_lea.vmem %s311_s8, 256  ;;  %p450_p11 = scmp.lt.s32.totalorder %s311_s8, %s311_s8 }
  0x24   :  { %356 = vmatpush3.bf16.msra.mxu0 %v395_v2  ;;  %364 = vmatpush3.bf16.msra.mxu1 %v398_v5  ;;  %p446_p10 = scmp.ne.s32.totalorder %s311_s8, %s445_s9  ;;  %p451_p12 = scmp.lt.s32.totalorder %s445_s9, %s445_s9 }
  0x25   :  { %373 = vmatprep.subr.bf16.mxu0 %v475_v0  ;;  %365 = vmatprep.subr.bf16.mxu1 %v475_v0 }
  0x26   :  { %p452_p13 = por %p451_p12, %p450_p11 }
  0x27   :  { %358 = vmatmul.mubr.msk.bf16.vlgmr.msra.gmra.mxu0 %vm84_vm1, %v396_v4 }
  0x28   :  { %381 = vmatprep.mubr.msk.bf16.mxu0 %vm476_vm0, %v475_v0  ;;  %366 = vmatpush3.bf16.msra.mxu1 %v399_v6  ;;  %p453_p0 = pnand %p452_p13, %p446_p10 }
  0x29   :  { %367 = vmatprep.subr.bf16.mxu1 %v475_v0  ;;  %374 = vmatpush3.bf16.msra.mxu0 %v401_v8 }
  0x2a   :  { %375 = vmatprep.subr.bf16.mxu0 %v475_v0 }
  0x2c   :  { %368 = vmatpush3.bf16.msra.mxu1 %v400_v7 }
  0x2d   :  { %376 = vmatpush3.bf16.msra.mxu0 %v402_v19 }
  0x2e   :  { %377 = vmatprep.subr.bf16.mxu0 %v475_v0 }
  0x31   :  { %378 = vmatpush3.bf16.msra.mxu0 %v403_v20 }
  0x32   :  { %379 = vmatprep.subr.bf16.mxu0 %v475_v0 }
  0x35   :  { %380 = vmatpush3.bf16.msra.mxu0 %v404_v21 }
  0xe7   :  { %v122_v10 = vpop.f32.mrf.mxu0 }
  0xe8   :  { %v123_v12 = vadd.f32 %v323_v9, %v122_v10 }
  0xe9   :  { %v359_v11 = vpop.f32.mrf.mxu0 }
  0xea   :  { %v129_v16 = vmax.f32 %v123_v12, 0.0 }
  0xeb   :  { %v125_v13 = vpop.f32.mrf.mxu0 }
  0xec   :  { %v126_v14 = vadd.f32 %v323_v9, %v125_v13 }
  0xed   :  { %v360_v15 = vpop.f32.mrf.mxu0 }
  0xee   :  { %v130_v17 = vmax.f32 %v126_v14, 0.0 }
  0xf0   :  { %v140_v18 = vpack.c.bf16 %v130_v17, %v129_v16 }
  0xf2   :  { %370 = vmatmul.mubr.msk.bf16.vlgmr.msra.gmra.mxu1 %vm171_vm2, %v140_v18 }
 0x1b2   :  { %v209_v23 = vpop.f32.mrf.mxu1 }
 0x1b3   :  { %v210_v25 = vadd.f32 %v328_v22, %v209_v23 }
 0x1b4   :  { %v371_v24 = vpop.f32.mrf.mxu1 }
 0x1b5   :  { %v216_v29 = vmax.f32 %v210_v25, 0.0 }
 0x1b6   :  { %v212_v26 = vpop.f32.mrf.mxu1 }
 0x1b7   :  { %v213_v27 = vadd.f32 %v328_v22, %v212_v26 }
 0x1b8   :  { %v372_v28 = vpop.f32.mrf.mxu1 }
 0x1b9   :  { %v217_v30 = vmax.f32 %v213_v27, 0.0 }
 0x1bb   :  { %v227_v31 = vpack.c.bf16 %v217_v30, %v216_v29 }
 0x1bd   :  { %382 = vmatmul.mubr.msk.bf16.vlgmr.msra.gmra.mxu0 %vm171_vm2, %v227_v31 }
 0x27d   :  { %v295_v33 = vpop.f32.mrf.mxu0 }
 0x27e   :  { %v296_v34 = vadd.f32 %v334_v32, %v295_v33 }
 0x27f   :  { %v383_v35 = vpop.f32.mrf.mxu0 }
 0x280   :  { %303 = vst.msk [vmem:[#allocation7] sm:$0xff] %vm302_vm3, %v296_v34 }
 0x281   :  { %v298_v36 = vpop.f32.mrf.mxu0 }
 0x282   :  { %v299_v37 = vadd.f32 %v334_v32, %v298_v36 }
 0x283   :  { %v384_v38 = vpop.f32.mrf.mxu0 }
 0x284   :  { %304 = vst.msk [vmem:[#allocation7 + $0x8] sm:$0xff] %vm302_vm3, %v299_v37 }
 0x285   :  { %456 = shalt.err (!%p453_p0)
}
 0x286   :  { %s478_s6 = smov 128   ;;  %s479_s10 = smov 8  }
 0x287   :  { %316 = dma.vmem_to_hbm [thread:$0]  %s311_s8, 256, %s574_s7, [#allocation4], %s478_s6, %s478_s6, %s479_s10  }
 0x288   :  { %469 = dma.done.wait [#allocation4], 256  }
 0x289   :  { %470 = vsyncadd [#allocation4], 4294967040 }
 0x28a   :  { %320 = vsyncpa [#allocation3], 1 }
 0x28b   :  { %321 = vsyncpa [#allocation6], 1 }
 0x28c   :  { %322 = vsyncpa [#allocation4], 1 }

// kernel: tpu_custom_call.1
= control target key start
LH: loop header
LB: loop body
LE: loop exit
PB: predicated region body
PF: predicated region fallthrough
CT: control target
= control target key end

     0   :  { %12 = vsyncpa [#allocation3], 0  ;;  %s567_s0 = inlined_call_operand.vmem [shape: bf16[16,32], index: 0, kind: input, shape index: {}]   ;;  %s568_s1 = inlined_call_operand.hbm [shape: bf16[32,64], index: 1, kind: input, shape index: {}]   ;;  %s569_s2 = inlined_call_operand.vmem [shape: f32[1,64], index: 2, kind: input, shape index: {}]   ;;  %s570_s3 = inlined_call_operand.vmem [shape: bf16[64,64], index: 3, kind: input, shape index: {}]   ;;  %s571_s4 = inlined_call_operand.hbm [shape: f32[1,64], index: 4, kind: input, shape index: {}]   ;;  %s572_s5 = inlined_call_operand.vmem [shape: bf16[64,16], index: 5, kind: input, shape index: {}]   ;;  %s573_s6 = inlined_call_operand.vmem [shape: f32[1,16], index: 6, kind: input, shape index: {}]   ;;  %s574_s7 = inlined_call_operand.hbm [shape: f32[16,16], index: 7, kind: output, shape index: {}]  }
   0x1   :  { %13 = vsyncpa [#allocation6], 0 }
   0x2   :  { %14 = vsyncpa [#allocation4], 0  ;;  %s471_s24 = smov [#allocation2]  }
   0x3   :  { %s22_s25 = sshll.u32 %s471_s24, 4  ;;  %s23_s25 = int_to_ptr.vmem [resolvable:$true] %s22_s25 }
   0x4   :  { %s413_s26 = scalar_lea.vmem %s23_s25, 256  ;;  %p418_p1 = scmp.lt.s32.totalorder %s23_s25, %s23_s25 }
   0x5   :  { %p414_p0 = scmp.ne.s32.totalorder %s23_s25, %s413_s26  ;;  %p419_p2 = scmp.lt.s32.totalorder %s413_s26, %s413_s26 }
   0x7   :  { %p420_p3 = por %p419_p2, %p418_p1 }
   0x9   :  { %p421_p4 = pnand %p420_p3, %p414_p0 }
   0xb   :  { %424 = shalt.err (!%p421_p4)
}
   0xc   :  { %s472_s27 = smov 64   ;;  %s473_s28 = smov 4  }
   0xd   :  { %28 = dma.hbm_to_vmem [thread:$0]  %s568_s1, 256, %s23_s25, [#allocation3], %s472_s27, %s472_s27, %s473_s28  }
   0xe   :  { %s474_s8 = smov [#allocation5]  }
   0xf   :  { %s39_s9 = sshll.u32 %s474_s8, 4  ;;  %s40_s9 = int_to_ptr.vmem [resolvable:$true] %s39_s9 }
  0x10   :  { %s433_s10 = scalar_lea.vmem %s40_s9, 16  ;;  %s437_s11 = scalar_lea.vmem %s40_s9, 32 }
  0x11   :  { %p434_p5 = scmp.ne.s32.totalorder %s40_s9, %s433_s10  ;;  %p438_p6 = scmp.lt.s32.totalorder %s40_s9, %s40_s9 }
  0x12   :  { %p439_p7 = scmp.lt.s32.totalorder %s437_s11, %s433_s10 }
  0x14   :  { %p440_p8 = por %p439_p7, %p438_p6 }
  0x16   :  { %p441_p9 = pnand %p440_p8, %p434_p5 }
  0x18   :  { %444 = shalt.err (!%p441_p9)
}
  0x19   :  { %42 = dma.hbm_to_vmem [thread:$0]  %s571_s4, 16, %s40_s9, [#allocation6]  }
  0x1a   :  { %465 = dma.done.wait [#allocation3], 256  }
  0x1b   :  { %466 = vsyncadd [#allocation3], 4294967040 }
  0x1c   :  { %467 = dma.done.wait [#allocation6], 16  }
  0x1d   :  { %468 = vsyncadd [#allocation6], 4294967280  ;;  %v475_v0 = vmov 0.0   ;;  %vm476_vm0 = vmmov 0   ;;  %v394_v1 = vld [vmem:[#allocation2 + $0x8] sm:$0xff]   ;;  %v395_v2 = vld [vmem:[#allocation2] sm:$0xff]  }
  0x1e   :  { %353 = vmatprep.subr.bf16.mxu0 %v475_v0  ;;  %357 = vmatprep.mubr.msk.bf16.mxu0 %vm476_vm0, %v475_v0  ;;  %v397_v3 = vld [vmem:[%s570_s3 + $0x18] sm:$0xff]   ;;  %v396_v4 = vld [vmem:[%s567_s0] sm:$0xff]   ;;  %vm84_vm1 = vcmask 261120   ;;  %v398_v5 = vld [vmem:[%s570_s3 + $0x10] sm:$0xff]   ;;  %vm171_vm2 = vcmask 523264   ;;  %vm302_vm3 = vcmask 130048  }
  0x1f   :  { %361 = vmatprep.subr.bf16.mxu1 %v475_v0  ;;  %369 = vmatprep.mubr.msk.bf16.mxu1 %vm476_vm0, %v475_v0  ;;  %v399_v6 = vld [vmem:[%s570_s3 + $0x8] sm:$0xff]   ;;  %v400_v7 = vld [vmem:[%s570_s3] sm:$0xff]   ;;  %v401_v8 = vld [vmem:[%s572_s5 + $0x18] sm:$0xff]  }
  0x20   :  { %354 = vmatpush3.bf16.msra.mxu0 %v394_v1  ;;  %362 = vmatpush3.bf16.msra.mxu1 %v397_v3  ;;  %v323_v9 = vld [vmem:[%s569_s2] ss:$0 sm:$0xff]  ;;  %v402_v19 = vld [vmem:[%s572_s5 + $0x10] sm:$0xff]   ;;  %v403_v20 = vld [vmem:[%s572_s5 + $0x8] sm:$0xff]  }
  0x21   :  { %355 = vmatprep.subr.bf16.mxu0 %v475_v0  ;;  %363 = vmatprep.subr.bf16.mxu1 %v475_v0  ;;  %v404_v21 = vld [vmem:[%s572_s5] sm:$0xff]   ;;  %v328_v22 = vld [vmem:[#allocation5] ss:$0 sm:$0xff]  ;;  %s477_s5 = smov [#allocation7]  }
  0x22   :  { %v334_v32 = vld [vmem:[%s573_s6] ss:$0 sm:$0xff]  ;;  %s310_s8 = sshll.u32 %s477_s5, 4  ;;  %s311_s8 = int_to_ptr.vmem [resolvable:$true] %s310_s8 }
  0x23   :  { %s445_s9 = scalar_lea.vmem %s311_s8, 256  ;;  %p450_p11 = scmp.lt.s32.totalorder %s311_s8, %s311_s8 }
  0x24   :  { %356 = vmatpush3.bf16.msra.mxu0 %v395_v2  ;;  %364 = vmatpush3.bf16.msra.mxu1 %v398_v5  ;;  %p446_p10 = scmp.ne.s32.totalorder %s311_s8, %s445_s9  ;;  %p451_p12 = scmp.lt.s32.totalorder %s445_s9, %s445_s9 }
  0x25   :  { %373 = vmatprep.subr.bf16.mxu0 %v475_v0  ;;  %365 = vmatprep.subr.bf16.mxu1 %v475_v0 }
  0x26   :  { %p452_p13 = por %p451_p12, %p450_p11 }
  0x27   :  { %358 = vmatmul.mubr.msk.bf16.vlgmr.msra.gmra.mxu0 %vm84_vm1, %v396_v4 }
  0x28   :  { %381 = vmatprep.mubr.msk.bf16.mxu0 %vm476_vm0, %v475_v0  ;;  %366 = vmatpush3.bf16.msra.mxu1 %v399_v6  ;;  %p453_p0 = pnand %p452_p13, %p446_p10 }
  0x29   :  { %367 = vmatprep.subr.bf16.mxu1 %v475_v0  ;;  %374 = vmatpush3.bf16.msra.mxu0 %v401_v8 }
  0x2a   :  { %375 = vmatprep.subr.bf16.mxu0 %v475_v0 }
  0x2c   :  { %368 = vmatpush3.bf16.msra.mxu1 %v400_v7 }
  0x2d   :  { %376 = vmatpush3.bf16.msra.mxu0 %v402_v19 }
  0x2e   :  { %377 = vmatprep.subr.bf16.mxu0 %v475_v0 }
  0x31   :  { %378 = vmatpush3.bf16.msra.mxu0 %v403_v20 }
  0x32   :  { %379 = vmatprep.subr.bf16.mxu0 %v475_v0 }
  0x35   :  { %380 = vmatpush3.bf16.msra.mxu0 %v404_v21 }
  0xe7   :  { %v122_v10 = vpop.f32.mrf.mxu0 }
  0xe8   :  { %v123_v12 = vadd.f32 %v323_v9, %v122_v10 }
  0xe9   :  { %v359_v11 = vpop.f32.mrf.mxu0 }
  0xea   :  { %v129_v16 = vmax.f32 %v123_v12, 0.0 }
  0xeb   :  { %v125_v13 = vpop.f32.mrf.mxu0 }
  0xec   :  { %v126_v14 = vadd.f32 %v323_v9, %v125_v13 }
  0xed   :  { %v360_v15 = vpop.f32.mrf.mxu0 }
  0xee   :  { %v130_v17 = vmax.f32 %v126_v14, 0.0 }
  0xf0   :  { %v140_v18 = vpack.c.bf16 %v130_v17, %v129_v16 }
  0xf2   :  { %370 = vmatmul.mubr.msk.bf16.vlgmr.msra.gmra.mxu1 %vm171_vm2, %v140_v18 }
 0x1b2   :  { %v209_v23 = vpop.f32.mrf.mxu1 }
 0x1b3   :  { %v210_v25 = vadd.f32 %v328_v22, %v209_v23 }
 0x1b4   :  { %v371_v24 = vpop.f32.mrf.mxu1 }
 0x1b5   :  { %v216_v29 = vmax.f32 %v210_v25, 0.0 }
 0x1b6   :  { %v212_v26 = vpop.f32.mrf.mxu1 }
 0x1b7   :  { %v213_v27 = vadd.f32 %v328_v22, %v212_v26 }
 0x1b8   :  { %v372_v28 = vpop.f32.mrf.mxu1 }
 0x1b9   :  { %v217_v30 = vmax.f32 %v213_v27, 0.0 }
 0x1bb   :  { %v227_v31 = vpack.c.bf16 %v217_v30, %v216_v29 }
 0x1bd   :  { %382 = vmatmul.mubr.msk.bf16.vlgmr.msra.gmra.mxu0 %vm171_vm2, %v227_v31 }
 0x27d   :  { %v295_v33 = vpop.f32.mrf.mxu0 }
 0x27e   :  { %v296_v34 = vadd.f32 %v334_v32, %v295_v33 }
 0x27f   :  { %v383_v35 = vpop.f32.mrf.mxu0 }
 0x280   :  { %303 = vst.msk [vmem:[#allocation7] sm:$0xff] %vm302_vm3, %v296_v34 }
 0x281   :  { %v298_v36 = vpop.f32.mrf.mxu0 }
 0x282   :  { %v299_v37 = vadd.f32 %v334_v32, %v298_v36 }
 0x283   :  { %v384_v38 = vpop.f32.mrf.mxu0 }
 0x284   :  { %304 = vst.msk [vmem:[#allocation7 + $0x8] sm:$0xff] %vm302_vm3, %v299_v37 }
 0x285   :  { %456 = shalt.err (!%p453_p0)
}
 0x286   :  { %s478_s6 = smov 128   ;;  %s479_s10 = smov 8  }
 0x287   :  { %316 = dma.vmem_to_hbm [thread:$0]  %s311_s8, 256, %s574_s7, [#allocation4], %s478_s6, %s478_s6, %s479_s10  }
 0x288   :  { %469 = dma.done.wait [#allocation4], 256  }
 0x289   :  { %470 = vsyncadd [#allocation4], 4294967040 }
 0x28a   :  { %320 = vsyncpa [#allocation3], 1 }
 0x28b   :  { %321 = vsyncpa [#allocation6], 1 }
 0x28c   :  { %322 = vsyncpa [#allocation4], 1 }

</bundles_post_ra>
